<compile_context>
chip_gen: v6e
topology: v6e:2x2x1
jax: 0.10.0
libtpu: 0.0.40
codegen_flags: <defaults>
</compile_context>

<pallas_src>
import jax
import jax.numpy as jnp
from jax import lax
from jax.experimental import pallas as pl
from jax.experimental.pallas import tpu as pltpu

EPS = 1e-5


# ----------------------------- Pallas kernels ------------------------------ #

def _conv_bn_relu_kernel(p_ref, w_ref, t_ref, o_ref):
    # p_ref: (1, K, TILE_P)  packed im2col patches (K = 9*Cin), channels-first
    # w_ref: (Cout, K)       BN-scale-folded conv weights
    # t_ref: (Cout, 1)       folded BN shift (beta + (bias - mean) * scale), f32
    # o_ref: (1, Cout, TILE_P)
    acc = jnp.dot(w_ref[...], p_ref[0], preferred_element_type=jnp.float32)
    o_ref[0] = jnp.maximum(acc + t_ref[...], 0.0).astype(o_ref.dtype)


def _attn_gate_kernel(c1_ref, pf_ref, x2_ref, w1a_ref, w1b_ref, t1_ref,
                      w2_ref, t2_ref, o_ref):
    # conv1(1x1)+bn1+relu -> conv2(1x1)+bn2+sigmoid -> gate conv2_shared
    # concat(c1, prev) is never materialized: conv1's weight is split into W1a/W1b.
    h = (jnp.dot(w1a_ref[...], c1_ref[0], preferred_element_type=jnp.float32)
         + jnp.dot(w1b_ref[...], pf_ref[0], preferred_element_type=jnp.float32))
    h = jnp.maximum(h + t1_ref[...], 0.0)                                # (Ch, TILE_P)
    z = jnp.dot(w2_ref[...], h.astype(w2_ref.dtype),
                preferred_element_type=jnp.float32) + t2_ref[...]        # (C2, TILE_P)
    # sigmoid via EUP exp + EUP approximate reciprocal (no VALU divide)
    attn = pl.reciprocal(1.0 + jnp.exp(-z), approx=True)
    o_ref[0] = (x2_ref[0].astype(jnp.float32) * attn).astype(o_ref.dtype)


# ----------------------------- Pallas wrappers ----------------------------- #

def _pick_tile_p(P, target=512):
    """Largest pixel tile <= target that divides P and is a multiple of 128 (or P itself)."""
    if P <= target:
        return P
    t = (target // 128) * 128
    while t >= 128:
        if P % t == 0:
            return t
        t -= 128
    return P


def conv3x3_bn_relu(patches, w, t, *, out_dtype, tile_p):
    # patches: (N, K, P), w: (Cout, K), t: (Cout, 1)  ->  (N, Cout, P)
    N, K, P = patches.shape
    Cout = w.shape[0]
    assert P % tile_p == 0
    nt = P // tile_p

    flops = 2 * N * P * K * Cout
    bytes_accessed = (int(patches.size) * patches.dtype.itemsize
                      + int(w.size) * w.dtype.itemsize
                      + int(t.size) * t.dtype.itemsize
                      + N * Cout * P * jnp.dtype(out_dtype).itemsize)

    return pl.pallas_call(
        _conv_bn_relu_kernel,
        out_shape=jax.ShapeDtypeStruct((N, Cout, P), out_dtype),
        grid=(N, nt),
        in_specs=[
            pl.BlockSpec((1, K, tile_p), lambda n, p: (n, 0, p)),
            pl.BlockSpec((Cout, K), lambda n, p: (0, 0)),
            pl.BlockSpec((Cout, 1), lambda n, p: (0, 0)),
        ],
        out_specs=pl.BlockSpec((1, Cout, tile_p), lambda n, p: (n, 0, p)),
        compiler_params=pltpu.CompilerParams(
            dimension_semantics=("parallel", "parallel")),
        cost_estimate=pl.CostEstimate(flops=flops, transcendentals=0,
                                      bytes_accessed=bytes_accessed),
    )(patches, w, t)


def attention_gate(c1, pf, x2, w1a, w1b, t1, w2, t2, *, out_dtype, tile_p):
    # c1: (N, C1, P), pf: (N, Cp, P), x2: (N, C2, P)
    # w1a: (Ch, C1), w1b: (Ch, Cp), t1: (Ch, 1), w2: (C2, Ch), t2: (C2, 1)
    N, C1, P = c1.shape
    Cp = pf.shape[1]
    C2 = x2.shape[1]
    Ch = w1a.shape[0]
    assert P % tile_p == 0
    nt = P // tile_p

    flops = 2 * N * P * (Ch * (C1 + Cp) + C2 * Ch) + 4 * N * P * C2
    transcendentals = N * P * C2
    bytes_accessed = sum(int(a.size) * a.dtype.itemsize
                         for a in (c1, pf, x2, w1a, w1b, t1, w2, t2))
    bytes_accessed += N * C2 * P * jnp.dtype(out_dtype).itemsize

    return pl.pallas_call(
        _attn_gate_kernel,
        out_shape=jax.ShapeDtypeStruct((N, C2, P), out_dtype),
        grid=(N, nt),
        in_specs=[
            pl.BlockSpec((1, C1, tile_p), lambda n, p: (n, 0, p)),
            pl.BlockSpec((1, Cp, tile_p), lambda n, p: (n, 0, p)),
            pl.BlockSpec((1, C2, tile_p), lambda n, p: (n, 0, p)),
            pl.BlockSpec((Ch, C1), lambda n, p: (0, 0)),
            pl.BlockSpec((Ch, Cp), lambda n, p: (0, 0)),
            pl.BlockSpec((Ch, 1), lambda n, p: (0, 0)),
            pl.BlockSpec((C2, Ch), lambda n, p: (0, 0)),
            pl.BlockSpec((C2, 1), lambda n, p: (0, 0)),
        ],
        out_specs=pl.BlockSpec((1, C2, tile_p), lambda n, p: (n, 0, p)),
        compiler_params=pltpu.CompilerParams(
            dimension_semantics=("parallel", "parallel")),
        cost_estimate=pl.CostEstimate(flops=flops, transcendentals=transcendentals,
                                      bytes_accessed=bytes_accessed),
    )(c1, pf, x2, w1a, w1b, t1, w2, t2)


# ------------------------------ JAX glue ----------------------------------- #

def im2col_3x3_cf(x):
    """NCHW, 3x3, padding=1 -> (N, 9*C, H*W), tap-major / channel-minor."""
    N, C, H, W = x.shape
    xp = jnp.pad(x, ((0, 0), (0, 0), (1, 1), (1, 1)))
    pats = [xp[:, :, dy:dy + H, dx:dx + W].reshape(N, C, H * W)
            for dy in range(3) for dx in range(3)]
    return jnp.concatenate(pats, axis=1)


def upsample_bilinear_2x_align_corners_nchw(x):
    """NCHW bilinear x2 with align_corners=True (matches nn.Upsample)."""
    N, C, H, W = x.shape
    Ho, Wo = 2 * H, 2 * W
    ys = jnp.arange(Ho, dtype=jnp.float32) * (float(H - 1) / float(Ho - 1))
    y0 = jnp.floor(ys).astype(jnp.int32)
    y1 = jnp.minimum(y0 + 1, H - 1)
    wy = (ys - y0.astype(jnp.float32)).reshape(1, 1, Ho, 1)
    xs = jnp.arange(Wo, dtype=jnp.float32) * (float(W - 1) / float(Wo - 1))
    x0 = jnp.floor(xs).astype(jnp.int32)
    x1 = jnp.minimum(x0 + 1, W - 1)
    wx = (xs - x0.astype(jnp.float32)).reshape(1, 1, 1, Wo)
    rows = x[:, :, y0, :] * (1.0 - wy) + x[:, :, y1, :] * wy
    return rows[:, :, :, x0] * (1.0 - wx) + rows[:, :, :, x1] * wx


def fold_bn(gamma, beta, mean, var, conv_bias):
    """Inference BN folded around conv: y = conv(x)*s + t, with s folded into weights."""
    s = gamma / jnp.sqrt(var + EPS)
    t = beta + (conv_bias - mean) * s
    return s, t


def attention_module_decoder_forward(conv1_shared, prev_layer_outs, conv2_shared, p,
                                     *, compute_dtype=jnp.bfloat16):
    """Inputs / output are NCHW (PyTorch convention). compute_dtype: bf16 fast path or f32."""
    cdt = compute_dtype
    c1 = conv1_shared.astype(cdt)          # (N, C1, H, W)
    pr = prev_layer_outs.astype(cdt)       # (N, Cp, Hp, Wp)
    x2 = conv2_shared.astype(cdt)          # (N, C2, H, W)

    N, C1, H, W = c1.shape
    C2 = x2.shape[1]
    Hp, Wp = pr.shape[2], pr.shape[3]
    Ch = p["conv3_w"].shape[-1]
    Co = p["conv_out_w"].shape[-1]
    P, Pp = H * W, Hp * Wp

    # ---- conv3 (3x3) + bn3 + relu : one K=9*Cin MXU matmul, BN scale folded into weights
    s3, t3 = fold_bn(p["bn3_gamma"], p["bn3_beta"], p["bn3_mean"], p["bn3_var"], p["conv3_b"])
    w3 = (p["conv3_w"].reshape(-1, Ch) * s3[None, :]).T.astype(cdt)          # (Ch, 9*Cp)
    prev_feat = conv3x3_bn_relu(im2col_3x3_cf(pr), w3, t3.reshape(Ch, 1),
                                out_dtype=cdt, tile_p=_pick_tile_p(Pp))       # (N, Ch, Pp)

    prev_feat = prev_feat.reshape(N, Ch, Hp, Wp)
    if (Hp, Wp) != (H, W):
        prev_feat = upsample_bilinear_2x_align_corners_nchw(prev_feat)
    assert conv1_shared.shape[2:] == conv2_shared.shape[2:]
    prev_feat = prev_feat.reshape(N, Ch, P).astype(cdt)

    # ---- attention branch (fused): conv1(1x1)+bn1+relu -> conv2(1x1)+bn2+sigmoid -> gate
    s1, t1 = fold_bn(p["bn1_gamma"], p["bn1_beta"], p["bn1_mean"], p["bn1_var"], p["conv1_b"])
    s2, t2 = fold_bn(p["bn2_gamma"], p["bn2_beta"], p["bn2_mean"], p["bn2_var"], p["conv2_b"])
    w1a = (p["conv1_w"][:C1] * s1[None, :]).T.astype(cdt)                    # (Ch, C1)
    w1b = (p["conv1_w"][C1:] * s1[None, :]).T.astype(cdt)                    # (Ch, Ch)
    w2 = (p["conv2_w"] * s2[None, :]).T.astype(cdt)                          # (C2, Ch)
    gated = attention_gate(c1.reshape(N, C1, P), prev_feat, x2.reshape(N, C2, P),
                           w1a, w1b, t1.reshape(Ch, 1), w2, t2.reshape(C2, 1),
                           out_dtype=cdt, tile_p=_pick_tile_p(P))             # (N, C2, P)

    # ---- conv_out (3x3) + bn_out + relu
    so, to = fold_bn(p["bno_gamma"], p["bno_beta"], p["bno_mean"], p["bno_var"], p["conv_out_b"])
    wo = (p["conv_out_w"].reshape(-1, Co) * so[None, :]).T.astype(cdt)       # (Co, 9*C2)
    out = conv3x3_bn_relu(im2col_3x3_cf(gated.reshape(N, C2, H, W)), wo, to.reshape(Co, 1),
                          out_dtype=jnp.float32, tile_p=_pick_tile_p(P))      # (N, Co, P)
    return out.reshape(N, Co, H, W)


# --------------------------- pure-JAX reference ----------------------------- #

def reference_forward(conv1_shared, prev_layer_outs, conv2_shared, p):
    def conv3x3(x, w9, b):
        w = w9.reshape(3, 3, w9.shape[1], w9.shape[2])         # HWIO, tap-major
        y = lax.conv_general_dilated(x, w, (1, 1), "SAME",
                                     dimension_numbers=("NCHW", "HWIO", "NCHW"))
        return y + b.reshape(1, -1, 1, 1)

    def bn(x, g, be, m, v):
        sh = (1, -1, 1, 1)
        return (x - m.reshape(sh)) / jnp.sqrt(v.reshape(sh) + EPS) * g.reshape(sh) + be.reshape(sh)

    H, W = conv1_shared.shape[2:]
    prf = jax.nn.relu(bn(conv3x3(prev_layer_outs, p["conv3_w"], p["conv3_b"]),
                         p["bn3_gamma"], p["bn3_beta"], p["bn3_mean"], p["bn3_var"]))
    if prf.shape[2:] != (H, W):
        prf = upsample_bilinear_2x_align_corners_nchw(prf)
    merged = jnp.concatenate([conv1_shared, prf], axis=1)
    h = jax.nn.relu(bn(jnp.einsum("nchw,cd->ndhw", merged, p["conv1_w"])
                       + p["conv1_b"].reshape(1, -1, 1, 1),
                       p["bn1_gamma"], p["bn1_beta"], p["bn1_mean"], p["bn1_var"]))
    a = jax.nn.sigmoid(bn(jnp.einsum("nchw,cd->ndhw", h, p["conv2_w"])
                          + p["conv2_b"].reshape(1, -1, 1, 1),
                          p["bn2_gamma"], p["bn2_beta"], p["bn2_mean"], p["bn2_var"]))
    gated = conv2_shared * a
    out = jax.nn.relu(bn(conv3x3(gated, p["conv_out_w"], p["conv_out_b"]),
                         p["bno_gamma"], p["bno_beta"], p["bno_mean"], p["bno_var"]))
    return out


# --------------------------------- main ------------------------------------ #

if __name__ == "__main__":
    key = jax.random.PRNGKey(0)
    keys = iter(jax.random.split(key, 40))

    # module config (small, synthetic)
    N, H, W = 2, 16, 16
    Hp, Wp = 8, 8                        # prev_layer_outs at half resolution -> exercises upsample
    C1, C2, Cp, Co, Ch = 8, 8, 8, 8, 16  # shared_1, shared_2, prev, out, hidden channels

    def nrm(shape, s=0.1):
        return jax.random.normal(next(keys), shape, jnp.float32) * s

    def bn_params(prefix, c, d):
        d[prefix + "_gamma"] = jax.random.uniform(next(keys), (c,), jnp.float32, 0.8, 1.2)
        d[prefix + "_beta"] = nrm((c,))
        d[prefix + "_mean"] = nrm((c,))
        d[prefix + "_var"] = jax.random.uniform(next(keys), (c,), jnp.float32, 0.5, 1.5)

    conv1_shared = jax.random.normal(next(keys), (N, C1, H, W), jnp.float32)
    prev_layer_outs = jax.random.normal(next(keys), (N, Cp, Hp, Wp), jnp.float32)
    conv2_shared = jax.random.normal(next(keys), (N, C2, H, W), jnp.float32)

    params = {}
    params["conv3_w"] = nrm((9, Cp, Ch))          # 3x3: taps k=dy*3+dx, [k, Cin, Cout]
    params["conv3_b"] = nrm((Ch,))
    bn_params("bn3", Ch, params)
    params["conv1_w"] = nrm((C1 + Ch, Ch))        # 1x1 conv as [Cin, Cout]
    params["conv1_b"] = nrm((Ch,))
    bn_params("bn1", Ch, params)
    params["conv2_w"] = nrm((Ch, C2))
    params["conv2_b"] = nrm((C2,))
    bn_params("bn2", C2, params)
    params["conv_out_w"] = nrm((9, C2, Co))
    params["conv_out_b"] = nrm((Co,))
    bn_params("bno", Co, params)

    ref = jax.block_until_ready(
        reference_forward(conv1_shared, prev_layer_outs, conv2_shared, params))

    # Tight numerical gate: f32 compute path (only differences vs reference are BN folding
    # algebra, matmul accumulation order and the EUP approx reciprocal in the sigmoid).
    out_f32 = attention_module_decoder_forward(conv1_shared, prev_layer_outs, conv2_shared,
                                               params, compute_dtype=jnp.float32)
    out_f32 = jax.block_until_ready(out_f32)
    assert out_f32.shape == (N, Co, H, W), out_f32.shape
    err_f32 = float(jnp.max(jnp.abs(out_f32 - ref)))
    assert err_f32 < 5e-3, f"f32 path mismatch vs reference: {err_f32}"

    # Fast path: bf16 weights/activations, f32 MXU accumulation. Loose sanity bound only
    # (differences vs the f32 reference are bf16 quantization of inputs/weights/intermediates).
    out_bf16 = attention_module_decoder_forward(conv1_shared, prev_layer_outs, conv2_shared,
                                                params, compute_dtype=jnp.bfloat16)
    out_bf16 = jax.block_until_ready(out_bf16)
    assert out_bf16.shape == (N, Co, H, W), out_bf16.shape
    err_bf16 = float(jnp.max(jnp.abs(out_bf16 - ref)))
    assert bool(jnp.all(jnp.isfinite(out_bf16))), "non-finite bf16 output"
    assert err_bf16 < 1e-1, f"bf16 path sanity bound exceeded: {err_bf16}"

    print("KERNEL_OK")
</pallas_src>

<mosaic_0001>
module attributes {stable_mosaic.version = 11 : i64} {
  func.func @_conv_bn_relu_kernel(%arg0: i32, %arg1: i32, %arg2: memref<1x72x64xf32, #tpu.memory_space<vmem>>, %arg3: memref<16x72xf32, #tpu.memory_space<vmem>>, %arg4: memref<16x1xf32, #tpu.memory_space<vmem>>, %arg5: memref<1x16x64xf32, #tpu.memory_space<vmem>>) attributes {dimension_semantics = [#tpu.dimension_semantics<parallel>, #tpu.dimension_semantics<parallel>], iteration_bounds = array<i64: 2, 1>, scalar_prefetch = 0 : i64, scratch_operands = 0 : i64, tpu.core_type = #tpu.core_type<tc>, window_params = [{transform_indices = @transform_0, window_bounds = array<i64: 1, 72, 64>}, {pipeline_mode = #tpu.pipeline_mode<synchronous>, transform_indices = @transform_1, window_bounds = array<i64: 16, 72>}, {pipeline_mode = #tpu.pipeline_mode<synchronous>, transform_indices = @transform_2, window_bounds = array<i64: 16, 1>}, {transform_indices = @transform_3, window_bounds = array<i64: 1, 16, 64>}]} {
    %c0 = arith.constant 0 : index
    %c0_0 = arith.constant 0 : index
    %0 = vector.load %arg3[%c0, %c0_0] : memref<16x72xf32, #tpu.memory_space<vmem>>, vector<16x72xf32>
    %c0_1 = arith.constant 0 : index
    %c0_2 = arith.constant 0 : index
    %c0_3 = arith.constant 0 : index
    %1 = vector.load %arg2[%c0_1, %c0_2, %c0_3] : memref<1x72x64xf32, #tpu.memory_space<vmem>>, vector<1x72x64xf32>
    %2 = vector.shape_cast %1 : vector<1x72x64xf32> to vector<72x64xf32>
    %cst = arith.constant dense<0.000000e+00> : vector<16x64xf32>
    %3 = tpu.matmul %0, %2, %cst {dimension_numbers = #tpu.dot_dimension_numbers<[1], [0], [0], [1], [0, 0, 1, 1], [], []>} : vector<16x72xf32>, vector<72x64xf32>, vector<16x64xf32> -> vector<16x64xf32>
    %c0_4 = arith.constant 0 : index
    %c0_5 = arith.constant 0 : index
    %4 = vector.load %arg4[%c0_4, %c0_5] : memref<16x1xf32, #tpu.memory_space<vmem>>, vector<16x1xf32>
    %5 = vector.broadcast %4 : vector<16x1xf32> to vector<16x64xf32>
    %6 = arith.addf %3, %5 : vector<16x64xf32>
    %cst_6 = arith.constant 0.000000e+00 : f32
    %7 = vector.broadcast %cst_6 : f32 to vector<16x64xf32>
    %8 = arith.maximumf %6, %7 : vector<16x64xf32>
    %c0_7 = arith.constant 0 : index
    %c0_8 = arith.constant 0 : index
    %c0_9 = arith.constant 0 : index
    %9 = vector.load %arg5[%c0_7, %c0_8, %c0_9] : memref<1x16x64xf32, #tpu.memory_space<vmem>>, vector<1x16x64xf32>
    %10 = vector.shape_cast %9 : vector<1x16x64xf32> to vector<16x64xf32>
    %11 = vector.shape_cast %8 : vector<16x64xf32> to vector<1x16x64xf32>
    tpu.vector_store %arg5[%c0_7, %c0_8, %c0_9], %11 {strides = array<i32>} : memref<1x16x64xf32, #tpu.memory_space<vmem>>, vector<1x16x64xf32>,
    return
  }
  func.func @transform_0(%arg0: i32, %arg1: i32) -> (i32, i32, i32) {
    %c0_i32 = arith.constant 0 : i32
    %c0_i32_0 = arith.constant 0 : i32
    return %arg0, %c0_i32, %arg1 : i32, i32, i32
  }
  func.func @transform_1(%arg0: i32, %arg1: i32) -> (i32, i32) {
    %c0_i32 = arith.constant 0 : i32
    %c0_i32_0 = arith.constant 0 : i32
    %c0_i32_1 = arith.constant 0 : i32
    return %c0_i32, %c0_i32_0 : i32, i32
  }
  func.func @transform_2(%arg0: i32, %arg1: i32) -> (i32, i32) {
    %c0_i32 = arith.constant 0 : i32
    %c0_i32_0 = arith.constant 0 : i32
    %c0_i32_1 = arith.constant 0 : i32
    return %c0_i32, %c0_i32_0 : i32, i32
  }
  func.func @transform_3(%arg0: i32, %arg1: i32) -> (i32, i32, i32) {
    %c0_i32 = arith.constant 0 : i32
    %c0_i32_0 = arith.constant 0 : i32
    return %arg0, %c0_i32, %arg1 : i32, i32, i32
  }
}

</mosaic_0001>

<bundles_post_ra>
// kernel: tpu_custom_call.1
= control target key start
LH: loop header
LB: loop body
LE: loop exit
PB: predicated region body
PF: predicated region fallthrough
CT: control target
= control target key end

     0   :  { %8 = vsyncpa [#allocation3], 0  ;;  %s734_s0 = inlined_call_operand.vmem [shape: f32[2,72,64], index: 0, kind: input, shape index: {}]   ;;  %s735_s1 = inlined_call_operand.vmem [shape: f32[16,72], index: 1, kind: input, shape index: {}]   ;;  %s736_s2 = inlined_call_operand.vmem [shape: f32[16,1], index: 2, kind: input, shape index: {}]   ;;  %s737_s3 = inlined_call_operand.hbm [shape: f32[2,16,64], index: 3, kind: output, shape index: {}]  }
   0x1   :  { %10 = vsyncpa [#allocation3 + $0x1], 0  ;;  %s606_s12 = smov 0   ;;  %s608_s13 = smov 0  }
   0x2   :  { %s610_s14 = smov 0   ;;  %s612_s15 = smov 0  }
   0x3   :  { %s614_s16 = smov 0   ;;  %s616_s17 = smov 0  }
   0x4 LB: > { %s397_s18 = sadd.s32 4294967295, %s580_s17   ;;  %s398_s19 = sadd.s32 4294967294, %s580_s17   ;;  %s580_s17 = sphi %s616_s17, %s16_s17   ;;  %s576_s16 = sphi %s614_s16, %s744_s16   ;;  %s572_s15 = sphi %s612_s15, %s743_s15   ;;  %s568_s14 = sphi %s610_s14, %s742_s14   ;;  %s564_s13 = sphi %s608_s13, %s741_s13   ;;  %s560_s12 = sphi %s606_s12, %s740_s12  }
   0x5   : > { %s28_s20 = sadd.s32 1, %s576_s16  ;;  %s107_s21 = sadd.s32 1, %s568_s14 }
   0x6   : > { %p30_p0 = scmp.ge.s32.totalorder %s28_s20, 2  ;;  %p117_p1 = scmp.ne.s32.totalorder %s568_s14, %s564_s13 }
   0x7   : > { %p118_p2 = scmp.eq.s32.totalorder %s397_s18, 1  ;;  %p123_p3 = scmp.ne.s32.totalorder %s564_s13, %s560_s12 }
   0x8   : > { %s746_s20 = smov (%p30_p0, %s28_s20), 0  ;;  %p124_p5 = scmp.eq.s32.totalorder %s398_s19, 1 }
   0x9   : > { %p646_p4 = por %p118_p2, %p117_p1  ;;  %s102_s23 = ssub.s32 %s576_s16, %s746_s20 }
   0xa   : > { %p401_p6 = scmp.ge.s32.totalorder %s580_s17, 1  ;;  %p105_p7 = scmp.eq.s32.totalorder %s102_s23, 0 }
   0xb   : > { %p653_p8 = por %p124_p5, %p123_p3  ;;  %p159_p9 = scmp.lt.s32.totalorder %s580_s17, 3 }
   0xc   : > { %s659_s25 = scalar_select %p105_p7, %s568_s14, %s107_s21  }
   0xd   : > { %p160_p10 = pnand %p401_p6, %p159_p9 }
   0xe   : > { %p186_p11 = scmp.lt.s32.totalorder (!%p160_p10), %s572_s15, 1  ;;  %s183_s18 = sand.u32 (!%p160_p10), 1, %s564_s13  }
   0xf   : > { %163 = sbr.rel (%p160_p10) target bundleno = 257 (0x101), region = 32  ;;  %s402_s19 = sshll.u32 (!%p160_p10), %s183_s18, 4 }
  0x10   : > { %s185_s21 = scalar_lea.vmem (!%p160_p10), [#allocation2], %s402_s19  ;;  %s411_s26 = sshll.u32 (!%p160_p10), %s572_s15, 8 }
  0x11   : > { %s319_s23 = sshll.u32 (!%p160_p10), %s185_s21, 4  ;;  %s687_s29 = scalar_lea.hbm (!%p160_p10), %s737_s3, %s411_s26  ;;  %s682_s23 = int_to_ptr.vmem [resolvable:$true] %s319_s23 }
  0x12   : > { %s583_s4 = smov (!%p160_p10), [#allocation2]  }
  0x13   : > { %s508_s5 = sshll.u32 (!%p160_p10), %s583_s4, 4  ;;  %s509_s5 = int_to_ptr.vmem [resolvable:$false] %s508_s5 }
  0x14   : > { %v194_v0 = vld [vmem:[%s735_s1] sm:$0xff]  ;;  %vm217_vm0 = vcmask 588800   ;;  %v582_v2 = vmov 0   ;;  %s187_s30 = scalar_select %p186_p11, %s572_s15, 1  ;;  %v206_v3 = vld [vmem:[%s736_s2 + $0x8] sm:$0xff]  ;;  %vm301_vm1 = vcmask 523264  }
  0x15   : > { %v205_v1 = vld [vmem:[%s736_s2] sm:$0xff]  ;;  %441 = vmatprep.mubr.msk.f32.mxu0 %vm217_vm0, %v194_v0  ;;  %503 = vset.pattern.permute.xlu0 %v582_v2  ;;  %v195_v13 = vld [vmem:[%s735_s1 + $0x8] sm:$0xff]  ;;  %s504_s15 = scalar_lea.vmem %s682_s23, 256  ;;  %p511_p1 = scmp.lt.s32.totalorder %s682_s23, %s509_s5 }
  0x16   : > { %209 = vperm.xlu0 %503, %v205_v1   ;;  %s444_s6 = smul.u32 72, %s187_s30  ;;  %s689_s30 = scalar_lea.sflag [#allocation3], %s183_s18 }
  0x17   : > { %p505_p12 = scmp.ne.s32.totalorder %s682_s23, %s504_s15 }
  0x18   : > { %s193_s9 = scalar_lea.vmem %s734_s0, %s444_s6  ;;  %s510_s6 = scalar_lea.vmem %s509_s5, 512 }
  0x19   : > { %v204_v4 = vld [vmem:[%s193_s9 + $0x40] sm:$0xff]  ;;  %v203_v5 = vld [vmem:[%s193_s9 + $0x38] sm:$0xff]  ;;  %v202_v6 = vld [vmem:[%s193_s9 + $0x30] sm:$0xff]  ;;  %p506_p13 = pnand %p505_p12, %p646_p4  ;;  %p512_p2 = scmp.lt.s32.totalorder %s510_s6, %s504_s15 }
  0x1a   : > { %214 = vperm.xlu0 %503, %v206_v3   ;;  %423 = vmatprep.subr.mxu0 %v204_v4  ;;  %v201_v7 = vld [vmem:[%s193_s9 + $0x28] sm:$0xff]  ;;  %v200_v8 = vld [vmem:[%s193_s9 + $0x20] sm:$0xff]  ;;  %v199_v9 = vld [vmem:[%s193_s9 + $0x18] sm:$0xff] }
  0x1b   : > { %424 = vmatpush3.msra.mxu0 %v204_v4  ;;  %v198_v10 = vld [vmem:[%s193_s9 + $0x10] sm:$0xff]  ;;  %v197_v11 = vld [vmem:[%s193_s9 + $0x8] sm:$0xff]  ;;  %v196_v12 = vld [vmem:[%s193_s9] sm:$0xff]  ;;  %p507_p0 = pneg %p506_p13  ;;  %p513_p3 = por %p512_p2, %p511_p1 }
  0x1c   : > { %425 = vmatprep.subr.mxu0 %v203_v5 }
  0x1d   : > { %426 = vmatpush3.msra.mxu0 %v203_v5  ;;  %p514_p5 = pnand %p513_p3, %p507_p0 }
  0x1e   : > { %427 = vmatprep.subr.mxu0 %v202_v6 }
  0x1f   : > { %428 = vmatpush3.msra.mxu0 %v202_v6 }
  0x20   : > { %429 = vmatprep.subr.mxu0 %v201_v7 }
  0x21   : > { %430 = vmatpush3.msra.mxu0 %v201_v7 }
  0x22   : > { %431 = vmatprep.subr.mxu0 %v200_v8 }
  0x23   : > { %432 = vmatpush3.msra.mxu0 %v200_v8 }
  0x24   : > { %433 = vmatprep.subr.mxu0 %v199_v9 }
  0x25   : > { %434 = vmatpush3.msra.mxu0 %v199_v9 }
  0x26   : > { %435 = vmatprep.subr.mxu0 %v198_v10 }
  0x27   : > { %436 = vmatpush3.msra.mxu0 %v198_v10 }
  0x28   : > { %437 = vmatprep.subr.mxu0 %v197_v11 }
  0x29   : > { %438 = vmatpush3.msra.mxu0 %v197_v11 }
  0x2a   : > { %439 = vmatprep.subr.mxu0 %v196_v12 }
  0x2b   : > { %440 = vmatpush3.msra.mxu0 %v196_v12 }
  0x2c   : > { %442 = vmatmul.mubr.msk.f32.vlgmr.msra.gmra.mxu0 %vm217_vm0, %v195_v13 }
  0x91   : > { %v210_v14 = vpop.permute.xlu0 %209 }
  0x95   : > { %v215_v15 = vpop.permute.xlu0 %214 }
  0xec   : > { %v443_v16 = vpop.f32.mrf.mxu0 }
  0xed   : > { %v296_v17 = vadd.f32 %v443_v16, %v215_v15 }
  0xee   : > { %v290_v18 = vpop.f32.mrf.mxu0 }
  0xef   : > { %v300_v19 = vmax.f32 %v296_v17, 0.0  ;;  %v291_v20 = vadd.f32 %v290_v18, %v210_v14 }
  0xf1   : > { %303 = vst.msk [vmem:[%s185_s21 + $0x8] sm:$0xff] %vm301_vm1, %v300_v19  ;;  %v299_v21 = vmax.f32 %v291_v20, 0.0 }
  0xf3   : > { %302 = vst.msk [vmem:[%s185_s21] sm:$0xff] %vm301_vm1, %v299_v21 }
  0xf4   : > { %517 = shalt.err (!%p514_p5)
}
  0xf5   : > { %s518_s7 = scalar_lea.hbm %s687_s29, 256  ;;  %s522_s10 = scalar_lea.hbm %s737_s3, 512 }
  0xf6   : > { %p519_p6 = scmp.ne.s32.totalorder %s687_s29, %s518_s7  ;;  %p523_p10 = scmp.lt.s32.totalorder %s687_s29, %s737_s3 }
  0xf7   : > { %p524_p11 = scmp.lt.s32.totalorder %s522_s10, %s518_s7 }
  0xf8   : > { %p520_p7 = pnand %p519_p6, %p646_p4 }
  0xf9   : > { %p525_p12 = por %p524_p11, %p523_p10 }
  0xfa   : > { %p521_p9 = pneg %p520_p7 }
  0xfc   : > { %p526_p13 = pnand %p525_p12, %p521_p9 }
  0xfe   : > { %529 = shalt.err (!%p526_p13)
}
  0xff   : > { %s584_s19 = smov 128   ;;  %s585_s21 = smov 8  }
 0x100   : > { %445 = dma.vmem_to_hbm [thread:$0]  (%p646_p4), %s682_s23, 256, %s687_s29, %s689_s30, %s584_s19, %s584_s19, %s585_s21  }
 0x101 PF: > { %p451_p0 = scmp.ge.s32.totalorder %s580_s17, 2  ;;  %s334_s26 = sand.u32 1, %s560_s12  }
 0x102   : > { %s335_s27 = scalar_lea.sflag [#allocation3], %s334_s26 }
 0x103   : > { %p448_p1 = pnand %p451_p0, %p653_p8 }
 0x105   : > { %p449_p2 = pneg %p448_p1 }
 0x107   : > { %555 = dma.done.wait (%p449_p2), %s335_s27, 256  }
 0x108   : > { %557 = vsyncadd (%p449_p2), %s335_s27, 4294967040  ;;  %s16_s17 = sadd.s32 1, %s580_s17   ;;  %s740_s12 = smov %s564_s13 }
 0x109   : > { %p13_p3 = scmp.ge.s32.totalorder %s16_s17, 4   ;;  %s741_s13 = smov %s568_s14 }
 0x10a   : > { %s742_s14 = smov %s659_s25  ;;  %s743_s15 = smov %s576_s16 }
 0x10b   : > { %s744_s16 = smov %s746_s20  ;;  %15 = sbr.rel (!%p13_p3) target bundleno = 4 (0x4), region = 67 }
 0x110   :  { %340 = vsyncpa [#allocation3], 1 }
 0x111   :  { %342 = vsyncpa [#allocation3 + $0x1], 1 }

</bundles_post_ra>
